<compile_context>
chip_gen: v5e
topology: v5e:2x2
jax: 0.10.0
libtpu: 0.0.40
codegen_flags: <defaults>
</compile_context>

<pallas_src>
import jax
import jax.numpy as jnp
from jax.experimental import pallas as pl
from jax.experimental.pallas import tpu as pltpu


def _round_up(n: int, m: int) -> int:
    return ((n + m - 1) // m) * m


def _cdiv(a: int, b: int) -> int:
    return (a + b - 1) // b


# ----------------------------------------------------------------------------
# Kernel: one (tm, tn) output tile, accumulated over the K grid axis.
# ----------------------------------------------------------------------------
def _text_head_kernel(x_ref, w_ref, b_ref, o_ref, acc_ref):
    # x_ref : (tm, tk)   activation tile
    # w_ref : (tk, tn)   pre-transposed weight tile (D, V layout)
    # b_ref : (1,  tn)   bias tile (f32)
    # o_ref : (tm, tn)   output tile
    # acc_ref: (tm, tn)  f32 accumulator scratch (resident across K)
    k = pl.program_id(2)

    @pl.when(k == 0)
    def _():
        acc_ref[...] = jnp.zeros_like(acc_ref)

    # Cast the activation to the streamed weight dtype (no-op for f32,
    # bf16 MXU path when the weight was prepared in bf16); accumulate in f32.
    acc_ref[...] += jnp.dot(
        x_ref[...].astype(w_ref.dtype),
        w_ref[...],
        preferred_element_type=jnp.float32,
    )

    @pl.when(k == pl.num_programs(2) - 1)
    def _():
        o_ref[...] = (acc_ref[...] + b_ref[...]).astype(o_ref.dtype)


# ----------------------------------------------------------------------------
# One-time parameter preparation (do at init / weight load, NOT per forward).
# ----------------------------------------------------------------------------
def prepare_text_head_params(weight, bias, *, param_dtype=jnp.float32):
    """Transpose (V, D) -> (D, V), pad V to a multiple of 128, cast weight."""
    V, D = weight.shape
    v_pad = _round_up(V, 128)
    w_t = jnp.asarray(weight).T            # (D, V): lane dim = vocab axis
    b = jnp.asarray(bias)
    if v_pad != V:
        w_t = jnp.pad(w_t, ((0, 0), (0, v_pad - V)))
        b = jnp.pad(b, (0, v_pad - V))
    w_t = w_t.astype(param_dtype)
    b2d = b.reshape(1, v_pad).astype(jnp.float32)
    return w_t, b2d, V


# ----------------------------------------------------------------------------
# Forward wrapper.
# ----------------------------------------------------------------------------
def text_head(x, w_t, bias2d, vocab_size, *,
              tn_max: int = 512, vmem_budget_bytes: int = 24 << 20):
    """TextHead forward: y = x @ W.T + b using prepared (D, Vpad) params."""
    D, v_pad = w_t.shape
    assert x.shape[-1] == D
    lead = x.shape[:-1]
    x2d = x.reshape(-1, D)
    M = x2d.shape[0]

    out_dtype = x.dtype
    x_bytes = jnp.dtype(x.dtype).itemsize
    w_bytes = jnp.dtype(w_t.dtype).itemsize
    o_bytes = jnp.dtype(out_dtype).itemsize

    # -- vocab (lane) tile: as large as allowed, multiple of 128, divides v_pad
    tn = 128
    for cand in (512, 384, 256, 128):
        if cand <= tn_max and v_pad % cand == 0:
            tn = cand
            break

    # -- reduction (K) tile: whole D unless it blows the VMEM budget.
    tk = D
    if D % 128 == 0:
        while tk % 256 == 0 and 2 * tk * tn * w_bytes > vmem_budget_bytes // 2:
            tk //= 2
    n_k = D // tk                       # == 1 when tk == D
    # TODO(synk): K-split for huge D that is not a multiple of 128 would need
    # D padding; not required for this head's embedding dims.

    # -- M (sublane) tile: maximize so the V x D weight streams ceil(M/tm)
    #    times (ideally once); equalize blocks to minimize row padding.
    fixed = 2 * tk * tn * w_bytes + 2 * 8 * tn * 4          # weight + bias bufs
    per_row = 2 * tk * x_bytes + 2 * tn * o_bytes + tn * 4  # x + out + f32 acc
    tm_budget = max((vmem_budget_bytes - fixed) // per_row, 8)
    tm_budget = max(8, (tm_budget // 8) * 8)
    m8 = _round_up(M, 8)
    if m8 <= tm_budget:
        tm, n_m = m8, 1
    else:
        n_m = _cdiv(m8, tm_budget)
        tm = _round_up(_cdiv(M, n_m), 8)
    m_pad = n_m * tm
    if m_pad != M:
        x2d = jnp.pad(x2d, ((0, m_pad - M), (0, 0)))

    # -- double-buffered working set -> explicit scoped-VMEM limit
    ws = (2 * tm * tk * x_bytes + 2 * tk * tn * w_bytes
          + 2 * tm * tn * o_bytes + tm * tn * 4 + 2 * 8 * tn * 4)
    vmem_limit = max(32 << 20, int(ws * 1.5) + (2 << 20))

    cost = pl.CostEstimate(
        flops=2 * m_pad * v_pad * D,
        transcendentals=0,
        bytes_accessed=(m_pad * D * x_bytes + D * v_pad * w_bytes
                        + m_pad * v_pad * o_bytes + v_pad * 4),
    )

    grid = (n_m, v_pad // tn, n_k)

    out = pl.pallas_call(
        _text_head_kernel,
        out_shape=jax.ShapeDtypeStruct((m_pad, v_pad), out_dtype),
        grid_spec=pltpu.PrefetchScalarGridSpec(
            num_scalar_prefetch=0,
            grid=grid,
            in_specs=[
                pl.BlockSpec((tm, tk), lambda i, j, k: (i, k)),   # x tile
                pl.BlockSpec((tk, tn), lambda i, j, k: (k, j)),   # weight tile
                pl.BlockSpec((1, tn), lambda i, j, k: (0, j)),    # bias tile
            ],
            out_specs=pl.BlockSpec((tm, tn), lambda i, j, k: (i, j)),
            scratch_shapes=[pltpu.VMEM((tm, tn), jnp.float32)],
        ),
        compiler_params=pltpu.CompilerParams(
            dimension_semantics=("parallel", "parallel", "arbitrary"),
            vmem_limit_bytes=vmem_limit,
        ),
        cost_estimate=cost,
    )(x2d, w_t, bias2d)

    out = out[:M, :vocab_size]
    return out.reshape(*lead, vocab_size)


if __name__ == "__main__":
    # config['model']['embedding_dim'] = 32, config['data']['vocab_size'] = 96
    dim = 32
    vocab_size = 96
    batch, seq = 2, 8

    key = jax.random.PRNGKey(0)
    kx, kw, kb = jax.random.split(key, 3)

    # nn.Linear default init: U(-1/sqrt(fan_in), 1/sqrt(fan_in))
    bound = 1.0 / (dim ** 0.5)
    weight = jax.random.uniform(kw, (vocab_size, dim), jnp.float32, -bound, bound)
    bias = jax.random.uniform(kb, (vocab_size,), jnp.float32, -bound, bound)
    x = jax.random.normal(kx, (batch, seq, dim), jnp.float32)

    y_ref = x @ weight.T + bias   # PyTorch nn.Linear reference

    # Exact f32 path (matches the PyTorch reference tightly).
    w_t32, b2d32, V = prepare_text_head_params(weight, bias,
                                               param_dtype=jnp.float32)
    y32 = text_head(x, w_t32, b2d32, V)
    jax.block_until_ready(y32)
    assert y32.shape == (batch, seq, vocab_size)
    assert jnp.allclose(y32, y_ref, atol=1e-5), "f32 path mismatch vs reference"

    # Fast bf16 weight-stream path (halved weight HBM traffic, bf16 MXU).
    w_t16, b2d16, _ = prepare_text_head_params(weight, bias,
                                               param_dtype=jnp.bfloat16)
    y16 = text_head(x, w_t16, b2d16, V)
    jax.block_until_ready(y16)
    assert jnp.allclose(y16, y_ref, atol=5e-2, rtol=5e-2), \
        "bf16 path mismatch vs reference"

    print("KERNEL_OK")
</pallas_src>

<mosaic_0001>
module attributes {stable_mosaic.version = 11 : i64} {
  func.func @_text_head_kernel(%arg0: i32, %arg1: i32, %arg2: i32, %arg3: memref<16x32xf32, #tpu.memory_space<vmem>>, %arg4: memref<32x128xf32, #tpu.memory_space<vmem>>, %arg5: memref<1x128xf32, #tpu.memory_space<vmem>>, %arg6: memref<16x128xf32, #tpu.memory_space<vmem>>, %arg7: memref<16x128xf32, #tpu.memory_space<vmem>>) attributes {dimension_semantics = [#tpu.dimension_semantics<parallel>, #tpu.dimension_semantics<parallel>, #tpu.dimension_semantics<arbitrary>], iteration_bounds = array<i64: 1, 1, 1>, scalar_prefetch = 0 : i64, scratch_operands = 1 : i64, tpu.core_type = #tpu.core_type<tc>, window_params = [{transform_indices = @transform_0, window_bounds = array<i64: 16, 32>}, {transform_indices = @transform_1, window_bounds = array<i64: 32, 128>}, {transform_indices = @transform_2, window_bounds = array<i64: 1, 128>}, {transform_indices = @transform_3, window_bounds = array<i64: 16, 128>}]} {
    %c0_i32 = arith.constant 0 : i32
    %0 = arith.cmpi eq, %arg2, %c0_i32 : i32
    %1 = arith.extui %0 : i1 to i32
    %c0_i32_0 = arith.constant 0 : i32
    %2 = arith.cmpi ne, %1, %c0_i32_0 : i32
    scf.if %2 {
      %cst_10 = arith.constant 0.000000e+00 : f32
      %12 = vector.broadcast %cst_10 : f32 to vector<16x128xf32>
      %c0_11 = arith.constant 0 : index
      %c0_12 = arith.constant 0 : index
      %13 = vector.load %arg7[%c0_11, %c0_12] : memref<16x128xf32, #tpu.memory_space<vmem>>, vector<16x128xf32>
      tpu.vector_store %arg7[%c0_11, %c0_12], %12 {strides = array<i32>} : memref<16x128xf32, #tpu.memory_space<vmem>>, vector<16x128xf32>,
    } else {
    }
    %c0 = arith.constant 0 : index
    %c0_1 = arith.constant 0 : index
    %3 = vector.load %arg7[%c0, %c0_1] : memref<16x128xf32, #tpu.memory_space<vmem>>, vector<16x128xf32>
    %c0_2 = arith.constant 0 : index
    %c0_3 = arith.constant 0 : index
    %4 = vector.load %arg3[%c0_2, %c0_3] : memref<16x32xf32, #tpu.memory_space<vmem>>, vector<16x32xf32>
    %c0_4 = arith.constant 0 : index
    %c0_5 = arith.constant 0 : index
    %5 = vector.load %arg4[%c0_4, %c0_5] : memref<32x128xf32, #tpu.memory_space<vmem>>, vector<32x128xf32>
    %cst = arith.constant dense<0.000000e+00> : vector<16x128xf32>
    %6 = tpu.matmul %4, %5, %cst {dimension_numbers = #tpu.dot_dimension_numbers<[1], [0], [0], [1], [0, 0, 1, 1], [], []>} : vector<16x32xf32>, vector<32x128xf32>, vector<16x128xf32> -> vector<16x128xf32>
    %7 = arith.addf %3, %6 : vector<16x128xf32>
    %c0_6 = arith.constant 0 : index
    %c0_7 = arith.constant 0 : index
    %8 = vector.load %arg7[%c0_6, %c0_7] : memref<16x128xf32, #tpu.memory_space<vmem>>, vector<16x128xf32>
    tpu.vector_store %arg7[%c0_6, %c0_7], %7 {strides = array<i32>} : memref<16x128xf32, #tpu.memory_space<vmem>>, vector<16x128xf32>,
    %c0_i32_8 = arith.constant 0 : i32
    %9 = arith.cmpi eq, %arg2, %c0_i32_8 : i32
    %10 = arith.extui %9 : i1 to i32
    %c0_i32_9 = arith.constant 0 : i32
    %11 = arith.cmpi ne, %10, %c0_i32_9 : i32
    scf.if %11 {
      %c0_10 = arith.constant 0 : index
      %c0_11 = arith.constant 0 : index
      %12 = vector.load %arg7[%c0_10, %c0_11] : memref<16x128xf32, #tpu.memory_space<vmem>>, vector<16x128xf32>
      %c0_12 = arith.constant 0 : index
      %c0_13 = arith.constant 0 : index
      %13 = vector.load %arg5[%c0_12, %c0_13] : memref<1x128xf32, #tpu.memory_space<vmem>>, vector<1x128xf32>
      %14 = vector.broadcast %13 : vector<1x128xf32> to vector<16x128xf32>
      %15 = arith.addf %12, %14 : vector<16x128xf32>
      %c0_14 = arith.constant 0 : index
      %c0_15 = arith.constant 0 : index
      %16 = vector.load %arg6[%c0_14, %c0_15] : memref<16x128xf32, #tpu.memory_space<vmem>>, vector<16x128xf32>
      tpu.vector_store %arg6[%c0_14, %c0_15], %15 {strides = array<i32>} : memref<16x128xf32, #tpu.memory_space<vmem>>, vector<16x128xf32>,
    } else {
    }
    return
  }
  func.func @transform_0(%arg0: i32, %arg1: i32, %arg2: i32) -> (i32, i32) {
    %c0_i32 = arith.constant 0 : i32
    return %arg0, %arg2 : i32, i32
  }
  func.func @transform_1(%arg0: i32, %arg1: i32, %arg2: i32) -> (i32, i32) {
    %c0_i32 = arith.constant 0 : i32
    return %arg2, %arg1 : i32, i32
  }
  func.func @transform_2(%arg0: i32, %arg1: i32, %arg2: i32) -> (i32, i32) {
    %c0_i32 = arith.constant 0 : i32
    %c0_i32_0 = arith.constant 0 : i32
    return %c0_i32, %arg1 : i32, i32
  }
  func.func @transform_3(%arg0: i32, %arg1: i32, %arg2: i32) -> (i32, i32) {
    %c0_i32 = arith.constant 0 : i32
    return %arg0, %arg1 : i32, i32
  }
}

</mosaic_0001>

<bundles_post_ra>
// kernel: tpu_custom_call.1
= control target key start
LH: loop header
LB: loop body
LE: loop exit
PB: predicated region body
PF: predicated region fallthrough
CT: control target
= control target key end

     0   :  { %8 = vsyncpa [#allocation4], 0  ;;  %s264_s0 = inlined_call_operand.hbm [shape: f32[16,32], index: 0, kind: input, shape index: {}]   ;;  %s265_s1 = inlined_call_operand.hbm [shape: f32[32,128], index: 1, kind: input, shape index: {}]   ;;  %s266_s2 = inlined_call_operand.vmem [shape: f32[1,128], index: 2, kind: input, shape index: {}]   ;;  %s267_s3 = inlined_call_operand.hbm [shape: f32[16,128], index: 3, kind: output, shape index: {}]  }
   0x1   :  { %9 = vsyncpa [#allocation7], 0 }
   0x2   :  { %10 = vsyncpa [#allocation5], 0  ;;  %s15_s14 = sshll.u32 %s264_s0, 4  ;;  %s218_s15 = smov [#allocation3]   ;;  %s16_s14 = int_to_ptr.hbm [resolvable:$true] %s15_s14 }
   0x3   :  { %s17_s16 = sshll.u32 %s218_s15, 4  ;;  %s28_s19 = sshll.u32 %s265_s1, 4  ;;  %s18_s16 = int_to_ptr.vmem [resolvable:$true] %s17_s16  ;;  %s29_s19 = int_to_ptr.hbm [resolvable:$true] %s28_s19 }
   0x4   :  { %s219_s20 = smov 128   ;;  %s220_s21 = smov 8  }
   0x5   :  { %23 = dma.hbm_to_vmem [thread:$0]  %s16_s14, 256, %s18_s16, [#allocation4], %s219_s20, %s219_s20, %s220_s21  }
   0x6   :  { %s221_s22 = smov [#allocation6]  }
   0x7   :  { %s30_s23 = sshll.u32 %s221_s22, 4  ;;  %s31_s23 = int_to_ptr.vmem [resolvable:$true] %s30_s23 }
   0x8   :  { %36 = dma.hbm_to_vmem [thread:$0]  %s29_s19, 512, %s31_s23, [#allocation7], %s219_s20, %s219_s20, %s220_s21  }
   0x9   :  { %212 = dma.done.wait [#allocation4], 256  }
   0xa   :  { %213 = vsyncadd [#allocation4], 4294967040 }
   0xb   :  { %214 = dma.done.wait [#allocation7], 512  }
   0xc   :  { %215 = vsyncadd [#allocation7], 4294966784  ;;  %v60_v0 = vld [vmem:[#allocation6 + $0x18] sm:$0xff]  ;;  %v59_v1 = vld [vmem:[#allocation6 + $0x10] sm:$0xff]  ;;  %vm61_vm0 = vcmask 261120   ;;  %s222_s24 = smov [#allocation8]  }
   0xd   :  { %80 = vmatpush.msra.mxu0 %v60_v0  ;;  %130 = vmatpush.msra.mxu1 %v60_v0  ;;  %v58_v2 = vld [vmem:[#allocation6 + $0x8] sm:$0xff]  ;;  %v57_v3 = vld [vmem:[#allocation6] sm:$0xff]  ;;  %v55_v4 = vld [vmem:[#allocation3] sm:$0xff]  ;;  %s112_s25 = sshll.u32 %s222_s24, 4  ;;  %s114_s28 = sshll.u32 %s267_s3, 4  ;;  %s113_s25 = int_to_ptr.vmem [resolvable:$true] %s112_s25  ;;  %s115_s28 = int_to_ptr.hbm [resolvable:$true] %s114_s28 }
   0xe   :  { %v56_v5 = vld [vmem:[#allocation3 + $0x8] sm:$0xff]  ;;  %v139_v6 = vld [vmem:[%s266_s2] ss:$0 sm:$0xff] }
   0xf   :  { %81 = vmatpush.msra.mxu0 %v59_v1  ;;  %131 = vmatpush.msra.mxu1 %v59_v1 }
  0x11   :  { %82 = vmatpush.msra.mxu0 %v58_v2  ;;  %132 = vmatpush.msra.mxu1 %v58_v2 }
  0x13   :  { %83 = vmatpush.msra.mxu0 %v57_v3  ;;  %133 = vmatpush.msra.mxu1 %v57_v3 }
  0x14   :  { %128 = vmatmul.msk.f32.vlgmr.msra.gmra.mxu0 %vm61_vm0, %v55_v4  ;;  %129 = vmatmul.msk.f32.vlgmr.msra.gmra.mxu1 %vm61_vm0, %v56_v5 }
  0x91   :  { %v85_v7 = vpop.f32.mrf.mxu0  ;;  %v88_v8 = vpop.f32.mrf.mxu1 }
  0x92   :  { %v104_v9 = vadd.f32 %v139_v6, %v85_v7  ;;  %v105_v10 = vadd.f32 %v139_v6, %v88_v8 }
  0x94   :  { %106 = vst [vmem:[#allocation8] sm:$0xff] %v104_v9 }
  0x95   :  { %107 = vst [vmem:[#allocation8 + $0x8] sm:$0xff] %v105_v10 }
  0x96   :  { %120 = dma.vmem_to_hbm [thread:$0]  %s113_s25, 256, %s115_s28, [#allocation5], %s219_s20, %s219_s20, %s220_s21  }
  0x97   :  { %216 = dma.done.wait [#allocation5], 256  }
  0x98   :  { %217 = vsyncadd [#allocation5], 4294967040 }
  0x99   :  { %125 = vsyncpa [#allocation4], 1 }
  0x9a   :  { %126 = vsyncpa [#allocation7], 1 }
  0x9b   :  { %127 = vsyncpa [#allocation5], 1 }

</bundles_post_ra>
